<compile_context>
chip_gen: v5e
topology: v5e:2x2
jax: 0.10.0
libtpu: 0.0.40
codegen_flags: <defaults>
</compile_context>

<pallas_src>
import functools

import jax
import jax.numpy as jnp
from jax import lax
from jax.experimental import pallas as pl
from jax.experimental.pallas import tpu as pltpu

# Deterministic "criterion_dict" instantiation (weights are compile-time consts).
CRITERIA = (("mse", 1.0), ("l1", 0.5))

LANE = 128


def _round_up(x, m):
    return ((x + m - 1) // m) * m


def _criterion_kernel(p_ref, t_ref, o_ref, sq_acc, abs_acc, *,
                      inv_n, w_mse, w_l1, chunk_rows, n_chunks):
    # grid = (n_splits [parallel], n_steps [arbitrary/reduction])
    i = pl.program_id(1)

    # init vreg-shaped accumulators on the first reduction step of this split
    @pl.when(i == 0)
    def _():
        sq_acc[...] = jnp.zeros_like(sq_acc)
        abs_acc[...] = jnp.zeros_like(abs_acc)

    # Fold this tile in (chunk_rows, 128) slices so intermediates stay small
    # (no full-tile f32 temporaries materialized by Mosaic).  Carries are two
    # (8,128) f32 vregs.
    def fold_chunk(c, carry):
        sq, ab = carry
        r0 = pl.multiple_of(c * chunk_rows, chunk_rows)
        p = p_ref[pl.ds(r0, chunk_rows), :].astype(jnp.float32)
        t = t_ref[pl.ds(r0, chunk_rows), :].astype(jnp.float32)
        d = p - t
        # (chunk_rows,128)->(chunk_rows//8,8,128) is a native-tile-aligned
        # regroup; the axis-0 sum is pure VALU vreg adds (no XLU).
        d3 = d.reshape(chunk_rows // 8, 8, LANE)
        sq = sq + jnp.sum(d3 * d3, axis=0)
        ab = ab + jnp.sum(jnp.abs(d3), axis=0)
        return sq, ab

    init = (jnp.zeros((8, LANE), jnp.float32),
            jnp.zeros((8, LANE), jnp.float32))
    sq, ab = lax.fori_loop(0, n_chunks, fold_chunk, init,
                           unroll=min(n_chunks, 8))
    sq_acc[...] += sq
    abs_acc[...] += ab

    # finalize this split: weighted combine + 1/N scale, write a lane-dense
    # (8,128) partial block; the tiny cross-lane reduce happens in the wrapper.
    @pl.when(i == pl.num_programs(1) - 1)
    def _():
        o_ref[0, :, :] = (jnp.float32(w_mse) * sq_acc[...]
                          + jnp.float32(w_l1) * abs_acc[...]) * jnp.float32(inv_n)


def criterion_forward(predicted, target, criteria=CRITERIA):
    """Weighted sum of MSE (mean) and L1 (mean) losses, computed in Pallas."""
    assert predicted.shape == target.shape
    assert predicted.dtype == target.dtype
    weights = dict(criteria)
    w_mse = float(weights.get("mse", 0.0))
    w_l1 = float(weights.get("l1", 0.0))

    n_total = predicted.size
    itemsize = jnp.dtype(predicted.dtype).itemsize
    sub = max(8, 32 // itemsize)   # sublane multiple: 8 f32, 16 bf16, 32 int8
    base_chunk = 256               # in-kernel fold chunk rows (multiple of sub)

    rows = pl.cdiv(n_total, LANE)

    # ~2 MiB lane-dense blocks: big enough to amortize the ~0.35us/step grid
    # overhead (>=85% of HBM roofline), small enough that the double-buffered
    # DMA footprint (2 inputs x 2 bufs = 8 MiB) fits every generation,
    # including v7x's 64 MiB physical VMEM.
    target_rows = max(base_chunk, (2 << 20) // (LANE * itemsize))

    if rows <= base_chunk:
        tile_rows = _round_up(rows, sub)
        chunk_rows = tile_rows
    else:
        tile_rows = min(target_rows, _round_up(rows, base_chunk))
        chunk_rows = base_chunk
    n_chunks = tile_rows // chunk_rows

    total_blocks = pl.cdiv(rows, tile_rows)
    n_splits = 1
    if total_blocks >= 2:
        # Always make the 2-way parallel split available (both TCs on v7x).
        total_blocks = _round_up(total_blocks, 2)
        n_splits = 2
    n_steps = total_blocks // n_splits

    # Identical zero padding of both inputs: the pad region contributes 0 to
    # both the squared and absolute sums, so inv_n stays 1/n_total (exact).
    padded_rows = total_blocks * tile_rows
    pad = padded_rows * LANE - n_total
    p_flat = predicted.reshape(-1)
    t_flat = target.reshape(-1)
    if pad:
        p_flat = jnp.pad(p_flat, (0, pad))
        t_flat = jnp.pad(t_flat, (0, pad))
    p2 = p_flat.reshape(padded_rows, LANE)
    t2 = t_flat.reshape(padded_rows, LANE)

    kernel = functools.partial(
        _criterion_kernel, inv_n=1.0 / n_total, w_mse=w_mse, w_l1=w_l1,
        chunk_rows=chunk_rows, n_chunks=n_chunks)

    tile_bytes = tile_rows * LANE * itemsize
    # Explicit scoped-VMEM limit sized to the double-buffered footprint
    # (v5e's default 16 MiB scoped limit would otherwise bind first); capped
    # well under v7x's 64 MiB physical VMEM.
    vmem_limit = int(max(16 << 20, min(4 * tile_bytes + (8 << 20), 48 << 20)))

    cost = pl.CostEstimate(
        flops=5 * n_total,                                   # sub, 2 mul, 2 add-ish
        transcendentals=0,
        bytes_accessed=2 * padded_rows * LANE * itemsize + n_splits * 8 * LANE * 4)

    partials = pl.pallas_call(
        kernel,
        out_shape=jax.ShapeDtypeStruct((n_splits, 8, LANE), jnp.float32),
        grid_spec=pltpu.PrefetchScalarGridSpec(
            num_scalar_prefetch=0,
            grid=(n_splits, n_steps),
            in_specs=[
                pl.BlockSpec((tile_rows, LANE),
                             lambda s, i: (s * n_steps + i, 0)),
                pl.BlockSpec((tile_rows, LANE),
                             lambda s, i: (s * n_steps + i, 0)),
            ],
            # output block depends only on the split index -> resident
            # accumulator across the reduction axis
            out_specs=pl.BlockSpec((1, 8, LANE), lambda s, i: (s, 0, 0)),
            scratch_shapes=[
                pltpu.VMEM((8, LANE), jnp.float32),  # sum of squared diffs
                pltpu.VMEM((8, LANE), jnp.float32),  # sum of abs diffs
            ],
        ),
        compiler_params=pltpu.CompilerParams(
            dimension_semantics=("parallel", "arbitrary"),
            vmem_limit_bytes=vmem_limit),
        cost_estimate=cost,
    )(p2, t2)

    # tiny final reduce (<= 2x8x128 f32) + sum over per-split partials
    return jnp.sum(partials)


if __name__ == "__main__":
    key = jax.random.PRNGKey(0)
    kp, kt = jax.random.split(key)
    # NCHW input, small shapes: batch=2, channels=4, spatial=16
    predicted = jax.random.normal(kp, (2, 4, 16, 16), dtype=jnp.float32)
    target = jax.random.normal(kt, (2, 4, 16, 16), dtype=jnp.float32)

    loss = jax.block_until_ready(criterion_forward(predicted, target))

    # reference (plain JAX) check of the weighted-loss semantics
    d = predicted - target
    ref = 1.0 * jnp.mean(d * d) + 0.5 * jnp.mean(jnp.abs(d))
    assert jnp.allclose(loss, ref, rtol=1e-5, atol=1e-5), (loss, ref)

    print("KERNEL_OK")
</pallas_src>

<mosaic_0001>
module attributes {stable_mosaic.version = 11 : i64} {
  func.func @_criterion_kernel(%arg0: i32, %arg1: i32, %arg2: memref<16x128xf32, #tpu.memory_space<vmem>>, %arg3: memref<16x128xf32, #tpu.memory_space<vmem>>, %arg4: memref<1x8x128xf32, #tpu.memory_space<vmem>>, %arg5: memref<8x128xf32, #tpu.memory_space<vmem>>, %arg6: memref<8x128xf32, #tpu.memory_space<vmem>>) attributes {dimension_semantics = [#tpu.dimension_semantics<parallel>, #tpu.dimension_semantics<arbitrary>], iteration_bounds = array<i64: 1, 1>, scalar_prefetch = 0 : i64, scratch_operands = 2 : i64, tpu.core_type = #tpu.core_type<tc>, window_params = [{transform_indices = @transform_0, window_bounds = array<i64: 16, 128>}, {transform_indices = @transform_1, window_bounds = array<i64: 16, 128>}, {transform_indices = @transform_2, window_bounds = array<i64: 1, 8, 128>}]} {
    %c0_i32 = arith.constant 0 : i32
    %0 = arith.cmpi eq, %arg1, %c0_i32 : i32
    %1 = arith.extui %0 : i1 to i32
    %c0_i32_0 = arith.constant 0 : i32
    %2 = arith.cmpi ne, %1, %c0_i32_0 : i32
    scf.if %2 {
      %cst_16 = arith.constant 0.000000e+00 : f32
      %28 = vector.broadcast %cst_16 : f32 to vector<8x128xf32>
      %c0_17 = arith.constant 0 : index
      %c0_18 = arith.constant 0 : index
      %29 = vector.load %arg5[%c0_17, %c0_18] : memref<8x128xf32, #tpu.memory_space<vmem>>, vector<8x128xf32>
      tpu.vector_store %arg5[%c0_17, %c0_18], %28 {strides = array<i32>} : memref<8x128xf32, #tpu.memory_space<vmem>>, vector<8x128xf32>,
      %cst_19 = arith.constant 0.000000e+00 : f32
      %30 = vector.broadcast %cst_19 : f32 to vector<8x128xf32>
      %c0_20 = arith.constant 0 : index
      %c0_21 = arith.constant 0 : index
      %31 = vector.load %arg6[%c0_20, %c0_21] : memref<8x128xf32, #tpu.memory_space<vmem>>, vector<8x128xf32>
      tpu.vector_store %arg6[%c0_20, %c0_21], %30 {strides = array<i32>} : memref<8x128xf32, #tpu.memory_space<vmem>>, vector<8x128xf32>,
    } else {
    }
    %cst = arith.constant 0.000000e+00 : f32
    %3 = vector.broadcast %cst : f32 to vector<8x128xf32>
    %cst_1 = arith.constant 0.000000e+00 : f32
    %4 = vector.broadcast %cst_1 : f32 to vector<8x128xf32>
    %c0_i32_2 = arith.constant 0 : i32
    %c16_i32 = arith.constant 16 : i32
    %5 = arith.muli %c0_i32_2, %c16_i32 : i32
    %6 = tpu.assume_multiple %5, 16 : i32
    %7 = arith.index_cast %6 : i32 to index
    %c0 = arith.constant 0 : index
    %8 = vector.load %arg2[%7, %c0] : memref<16x128xf32, #tpu.memory_space<vmem>>, vector<16x128xf32>
    %9 = arith.index_cast %6 : i32 to index
    %c0_3 = arith.constant 0 : index
    %10 = vector.load %arg3[%9, %c0_3] : memref<16x128xf32, #tpu.memory_space<vmem>>, vector<16x128xf32>
    %11 = arith.subf %8, %10 : vector<16x128xf32>
    %12 = vector.shape_cast %11 : vector<16x128xf32> to vector<2x8x128xf32>
    %13 = arith.mulf %12, %12 : vector<2x8x128xf32>
    %cst_4 = arith.constant dense<0.000000e+00> : vector<8x128xf32>
    %14 = vector.multi_reduction <add>, %13, %cst_4 [0] : vector<2x8x128xf32> to vector<8x128xf32>
    %15 = arith.addf %3, %14 : vector<8x128xf32>
    %16 = math.absf %12 : vector<2x8x128xf32>
    %cst_5 = arith.constant dense<0.000000e+00> : vector<8x128xf32>
    %17 = vector.multi_reduction <add>, %16, %cst_5 [0] : vector<2x8x128xf32> to vector<8x128xf32>
    %18 = arith.addf %4, %17 : vector<8x128xf32>
    %c1_i32 = arith.constant 1 : i32
    %c0_6 = arith.constant 0 : index
    %c0_7 = arith.constant 0 : index
    %19 = vector.load %arg5[%c0_6, %c0_7] : memref<8x128xf32, #tpu.memory_space<vmem>>, vector<8x128xf32>
    %20 = arith.addf %19, %15 : vector<8x128xf32>
    %c0_8 = arith.constant 0 : index
    %c0_9 = arith.constant 0 : index
    %21 = vector.load %arg5[%c0_8, %c0_9] : memref<8x128xf32, #tpu.memory_space<vmem>>, vector<8x128xf32>
    tpu.vector_store %arg5[%c0_8, %c0_9], %20 {strides = array<i32>} : memref<8x128xf32, #tpu.memory_space<vmem>>, vector<8x128xf32>,
    %c0_10 = arith.constant 0 : index
    %c0_11 = arith.constant 0 : index
    %22 = vector.load %arg6[%c0_10, %c0_11] : memref<8x128xf32, #tpu.memory_space<vmem>>, vector<8x128xf32>
    %23 = arith.addf %22, %18 : vector<8x128xf32>
    %c0_12 = arith.constant 0 : index
    %c0_13 = arith.constant 0 : index
    %24 = vector.load %arg6[%c0_12, %c0_13] : memref<8x128xf32, #tpu.memory_space<vmem>>, vector<8x128xf32>
    tpu.vector_store %arg6[%c0_12, %c0_13], %23 {strides = array<i32>} : memref<8x128xf32, #tpu.memory_space<vmem>>, vector<8x128xf32>,
    %c0_i32_14 = arith.constant 0 : i32
    %25 = arith.cmpi eq, %arg1, %c0_i32_14 : i32
    %26 = arith.extui %25 : i1 to i32
    %c0_i32_15 = arith.constant 0 : i32
    %27 = arith.cmpi ne, %26, %c0_i32_15 : i32
    scf.if %27 {
      %c0_16 = arith.constant 0 : index
      %c0_17 = arith.constant 0 : index
      %28 = vector.load %arg5[%c0_16, %c0_17] : memref<8x128xf32, #tpu.memory_space<vmem>>, vector<8x128xf32>
      %cst_18 = arith.constant 1.000000e+00 : f32
      %29 = vector.broadcast %cst_18 : f32 to vector<8x128xf32>
      %30 = arith.mulf %29, %28 : vector<8x128xf32>
      %c0_19 = arith.constant 0 : index
      %c0_20 = arith.constant 0 : index
      %31 = vector.load %arg6[%c0_19, %c0_20] : memref<8x128xf32, #tpu.memory_space<vmem>>, vector<8x128xf32>
      %cst_21 = arith.constant 5.000000e-01 : f32
      %32 = vector.broadcast %cst_21 : f32 to vector<8x128xf32>
      %33 = arith.mulf %32, %31 : vector<8x128xf32>
      %34 = arith.addf %30, %33 : vector<8x128xf32>
      %cst_22 = arith.constant 4.8828125E-4 : f32
      %35 = vector.broadcast %cst_22 : f32 to vector<8x128xf32>
      %36 = arith.mulf %34, %35 : vector<8x128xf32>
      %c0_23 = arith.constant 0 : index
      %c0_24 = arith.constant 0 : index
      %c0_25 = arith.constant 0 : index
      %37 = vector.load %arg4[%c0_23, %c0_24, %c0_25] : memref<1x8x128xf32, #tpu.memory_space<vmem>>, vector<1x8x128xf32>
      %38 = vector.shape_cast %37 : vector<1x8x128xf32> to vector<8x128xf32>
      %39 = vector.shape_cast %36 : vector<8x128xf32> to vector<1x8x128xf32>
      tpu.vector_store %arg4[%c0_23, %c0_24, %c0_25], %39 {strides = array<i32>} : memref<1x8x128xf32, #tpu.memory_space<vmem>>, vector<1x8x128xf32>,
    } else {
    }
    return
  }
  func.func @transform_0(%arg0: i32, %arg1: i32) -> (i32, i32) {
    %c1_i32 = arith.constant 1 : i32
    %0 = arith.muli %arg0, %c1_i32 : i32
    %1 = arith.addi %0, %arg1 : i32
    %c0_i32 = arith.constant 0 : i32
    %c0_i32_0 = arith.constant 0 : i32
    return %1, %c0_i32 : i32, i32
  }
  func.func @transform_1(%arg0: i32, %arg1: i32) -> (i32, i32) {
    %c1_i32 = arith.constant 1 : i32
    %0 = arith.muli %arg0, %c1_i32 : i32
    %1 = arith.addi %0, %arg1 : i32
    %c0_i32 = arith.constant 0 : i32
    %c0_i32_0 = arith.constant 0 : i32
    return %1, %c0_i32 : i32, i32
  }
  func.func @transform_2(%arg0: i32, %arg1: i32) -> (i32, i32, i32) {
    %c0_i32 = arith.constant 0 : i32
    %c0_i32_0 = arith.constant 0 : i32
    %c0_i32_1 = arith.constant 0 : i32
    return %arg0, %c0_i32, %c0_i32_0 : i32, i32, i32
  }
}

</mosaic_0001>

<bundles_post_ra>
// kernel: tpu_custom_call.1
= control target key start
LH: loop header
LB: loop body
LE: loop exit
PB: predicated region body
PF: predicated region fallthrough
CT: control target
= control target key end

     0   :  { %7 = vsyncpa [#allocation5], 0  ;;  %s221_s0 = inlined_call_operand.hbm [shape: f32[16,128], index: 0, kind: input, shape index: {}]   ;;  %s222_s1 = inlined_call_operand.hbm [shape: f32[16,128], index: 1, kind: input, shape index: {}]   ;;  %s223_s2 = inlined_call_operand.hbm [shape: f32[1,8,128], index: 2, kind: output, shape index: {}]  }
   0x1   :  { %8 = vsyncpa [#allocation8], 0 }
   0x2   :  { %9 = vsyncpa [#allocation6], 0  ;;  %s18_s11 = sshll.u32 %s221_s0, 4  ;;  %s192_s12 = smov [#allocation4]   ;;  %s19_s11 = int_to_ptr.hbm [resolvable:$true] %s18_s11 }
   0x3   :  { %s20_s13 = sshll.u32 %s192_s12, 4  ;;  %s35_s16 = sshll.u32 %s222_s1, 4  ;;  %s21_s13 = int_to_ptr.vmem [resolvable:$true] %s20_s13  ;;  %s36_s16 = int_to_ptr.hbm [resolvable:$true] %s35_s16 }
   0x4   :  { %s193_s17 = smov 128   ;;  %s194_s18 = smov 8  }
   0x5   :  { %26 = dma.hbm_to_vmem [thread:$0]  %s19_s11, 256, %s21_s13, [#allocation5], %s193_s17, %s193_s17, %s194_s18  }
   0x6   :  { %s195_s19 = smov [#allocation7]  }
   0x7   :  { %s37_s20 = sshll.u32 %s195_s19, 4  ;;  %s38_s20 = int_to_ptr.vmem [resolvable:$true] %s37_s20 }
   0x8   :  { %43 = dma.hbm_to_vmem [thread:$0]  %s36_s16, 256, %s38_s20, [#allocation8], %s193_s17, %s193_s17, %s194_s18  }
   0x9   :  { %186 = dma.done.wait [#allocation5], 256  }
   0xa   :  { %187 = vsyncadd [#allocation5], 4294967040 }
   0xb   :  { %188 = dma.done.wait [#allocation8], 256  }
   0xc   :  { %189 = vsyncadd [#allocation8], 4294967040  ;;  %v62_v0 = vld [vmem:[#allocation4] sm:$0xff]  ;;  %v63_v1 = vld [vmem:[#allocation4 + $0x8] sm:$0xff]  ;;  %s196_s0 = smov [#allocation9]   ;;  %s98_s23 = sshll.u32 %s223_s2, 4  ;;  %s99_s23 = int_to_ptr.hbm [resolvable:$true] %s98_s23 }
   0xd   :  { %v64_v2 = vld [vmem:[#allocation7] sm:$0xff]  ;;  %v65_v3 = vld [vmem:[#allocation7 + $0x8] sm:$0xff]  ;;  %s96_s1 = sshll.u32 %s196_s0, 4  ;;  %s97_s1 = int_to_ptr.vmem [resolvable:$true] %s96_s1 }
   0xe   :  { %v66_v4 = vsub.f32 %v62_v0, %v64_v2  ;;  %v67_v5 = vsub.f32 %v63_v1, %v65_v3 }
  0x10   :  { %v68_v6 = vmul.f32 %v66_v4, %v66_v4  ;;  %v72_v7 = vand.u32 2147483647, %v66_v4  ;;  %v69_v8 = vmul.f32 %v67_v5, %v67_v5  ;;  %v73_v9 = vand.u32 2147483647, %v67_v5 }
  0x12   :  { %v70_v10 = vadd.f32 %v69_v8, %v68_v6  ;;  %v74_v11 = vadd.f32 %v73_v9, %v72_v7 }
  0x14   :  { %v87_v12 = vmul.f32 0.5, %v74_v11 }
  0x16   :  { %v88_v13 = vadd.f32 %v87_v12, %v70_v10 }
  0x18   :  { %v89_v14 = vmul.f32 0.00048828125, %v88_v13 }
  0x1a   :  { %90 = vst [vmem:[#allocation9] sm:$0xff] %v89_v14 }
  0x1b   :  { %101 = dma.vmem_to_hbm [thread:$0]  %s97_s1, 128, %s99_s23, [#allocation6]  }
  0x1c   :  { %190 = dma.done.wait [#allocation6], 128  }
  0x1d   :  { %191 = vsyncadd [#allocation6], 4294967168 }
  0x1e   :  { %106 = vsyncpa [#allocation5], 1 }
  0x1f   :  { %107 = vsyncpa [#allocation8], 1 }
  0x20   :  { %108 = vsyncpa [#allocation6], 1 }

</bundles_post_ra>
